<compile_context>
chip_gen: v5e
topology: v5e:2x2
jax: 0.10.0
libtpu: 0.0.40
codegen_flags: <defaults>
</compile_context>

<pallas_src>
import jax
import jax.numpy as jnp
from jax.experimental import pallas as pl
from jax.experimental.pallas import tpu as pltpu

STATE_SIZE = 8
RECURRENT_SIZE = 5
ACTION_SIZE = 4
FC1_UNITS = 64
FC2_UNITS = 128

IN_DIM = STATE_SIZE + RECURRENT_SIZE      # 13
OUT_DIM = ACTION_SIZE + RECURRENT_SIZE    # 9

_FC2B_OFF = 128                           # lane offset of fc2(prev_rec) partial in p
_WIN_COLS = _FC2B_OFF + FC2_UNITS         # 256
_W2H_COLS = FC2_UNITS + OUT_DIM           # 137 (fc2 | fused x1-head partial)
_B1_OFF, _B2_OFF, _BH_OFF = 0, 128, 256   # bias-slab lane offsets (vreg aligned)
_BPACK_COLS = 384

_MIN_GRID_STEPS = 2                       # keep >=2 tiles so v7x megacore splits
_VMEM_LIMIT_BYTES = 48 * 1024 * 1024      # headroom under v7x's 64 MiB physical


def _round_up(n, m):
    return (n + m - 1) // m * m


# ----------------------------------------------------------------------------
# Kernel
# ----------------------------------------------------------------------------
def _qnet_kernel(x_ref, w_in_ref, w2h_ref, whb_ref, b_ref, out_ref):
    mxu_dtype = w_in_ref.dtype

    b1 = b_ref[:, _B1_OFF:_B1_OFF + FC1_UNITS]                # [1, 64]  f32
    b2 = b_ref[:, _B2_OFF:_B2_OFF + FC2_UNITS]                # [1, 128] f32
    bh = b_ref[:, _BH_OFF:_BH_OFF + OUT_DIM]                  # [1, 9]   (= [b4 | b3])

    x = x_ref[...].astype(mxu_dtype)                          # [TB, 13]

    # Fused input matmul (K = 13):
    #   lanes   0: 64 -> obs      @ W1        (fc1 pre-activation, no bias yet)
    #   lanes 128:256 -> prev_rec @ W2[64:]   (fc2 partial from recurrent input)
    p = jnp.dot(x, w_in_ref[...], preferred_element_type=jnp.float32)    # [TB, 256]

    x1 = jnp.maximum(p[:, :FC1_UNITS] + b1, 0.0)                          # [TB, 64] f32

    # Fused x1 matmul:
    #   lanes   0:128 -> x1 @ W2[:64]         (fc2 x1 partial)
    #   lanes 128:137 -> x1 @ [0 | W3[:64]]   (head partial from x1)
    q = jnp.dot(x1.astype(mxu_dtype), w2h_ref[...],
                preferred_element_type=jnp.float32)                       # [TB, 137]

    x2 = jnp.maximum(q[:, :FC2_UNITS] + p[:, _FC2B_OFF:] + b2, 0.0)       # [TB, 128] f32

    # Output heads: lanes 0:4 = fc4 (action), lanes 4:9 = fc3 (recurrent, pre-sigmoid).
    h = (jnp.dot(x2.astype(mxu_dtype), whb_ref[...],
                 preferred_element_type=jnp.float32)
         + q[:, FC2_UNITS:] + bh)                                         # [TB, 9]

    lane = jax.lax.broadcasted_iota(jnp.int32, h.shape, 1)
    out_ref[...] = jnp.where(lane < ACTION_SIZE, h, jax.nn.sigmoid(h))


# ----------------------------------------------------------------------------
# One-time parameter packing (hoisted out of the per-call hot path)
# ----------------------------------------------------------------------------
def pack_params(params, mxu_dtype=jnp.bfloat16):
    """Pack raw (w1,b1,w2,b2,w3,b3,w4,b4) into MXU-friendly slabs. Call once."""
    w1, b1, w2, b2, w3, b3, w4, b4 = params

    # W_in [13, 256]: cols 0:64 = W1 (from obs rows), cols 128:256 = W2[64:]
    # (fc2's prev_recurrent rows). Exact: zero blocks only add *0.0 terms.
    w_in = jnp.zeros((IN_DIM, _WIN_COLS), jnp.float32)
    w_in = w_in.at[:STATE_SIZE, :FC1_UNITS].set(w1)
    w_in = w_in.at[STATE_SIZE:, _FC2B_OFF:].set(w2[FC1_UNITS:])

    # W2h [64, 137]: cols 0:128 = W2[:64]; cols 128:132 = 0 (action head gets no
    # x1 contribution); cols 132:137 = W3[:64] (recurrent head x1 partial).
    w2h = jnp.concatenate(
        [w2[:FC1_UNITS],
         jnp.zeros((FC1_UNITS, ACTION_SIZE), jnp.float32),
         w3[:FC1_UNITS]], axis=1)

    # Whb [128, 9]: cols 0:4 = W4 (action), cols 4:9 = W3[64:] (recurrent x2 partial).
    whb = jnp.concatenate([w4, w3[FC1_UNITS:]], axis=1)

    # Bias slab [1, 384] at vreg-aligned lane offsets 0 / 128 / 256; kept f32.
    b_pack = jnp.zeros((1, _BPACK_COLS), jnp.float32)
    b_pack = b_pack.at[:, _B1_OFF:_B1_OFF + FC1_UNITS].set(b1)
    b_pack = b_pack.at[:, _B2_OFF:_B2_OFF + FC2_UNITS].set(b2)
    b_pack = b_pack.at[:, _BH_OFF:_BH_OFF + ACTION_SIZE].set(b4)
    b_pack = b_pack.at[:, _BH_OFF + ACTION_SIZE:_BH_OFF + OUT_DIM].set(b3)

    return (w_in.astype(mxu_dtype), w2h.astype(mxu_dtype),
            whb.astype(mxu_dtype), b_pack)


# ----------------------------------------------------------------------------
# Forward wrapper
# ----------------------------------------------------------------------------
def _choose_tile(batch, block_b):
    """Batch tile: multiple of 8, <= block_b, and >=_MIN_GRID_STEPS grid steps
    when the batch allows it (v7x has 2 TensorCores)."""
    block_b = max(8, _round_up(int(block_b), 8))
    b_pad8 = _round_up(batch, 8)
    target = max(8, _round_up(pl.cdiv(b_pad8, _MIN_GRID_STEPS), 8))
    tb = min(block_b, target)
    b_pad = _round_up(b_pad8, tb)
    return tb, b_pad


def internal_qnetwork_forward(x, packed_params, *, block_b=4096):
    """Pallas forward pass of InternalQNetwork.

    x: [B, state+recurrent] f32.  packed_params: output of pack_params(...).
    block_b: batch-tile upper bound (primary tuning knob; sweep 2048-8192 —
    keep it <= ~4096 on v7x unless vmem_limit is raised).
    """
    w_in, w2h, whb, b_pack = packed_params
    B = x.shape[0]

    tb, b_pad = _choose_tile(B, block_b)
    if b_pad != B:
        x = jnp.pad(x, ((0, b_pad - B), (0, 0)))
    grid = (b_pad // tb,)

    pinned = lambda shape: pl.BlockSpec(shape, lambda i: (0, 0))   # fetched once

    out = pl.pallas_call(
        _qnet_kernel,
        out_shape=jax.ShapeDtypeStruct((b_pad, OUT_DIM), jnp.float32),
        grid=grid,
        in_specs=[
            pl.BlockSpec((tb, IN_DIM), lambda i: (i, 0)),   # x tiles (pipelined)
            pinned((IN_DIM, _WIN_COLS)),                    # W_in  [13, 256]
            pinned((FC1_UNITS, _W2H_COLS)),                 # W2h   [64, 137]
            pinned((FC2_UNITS, OUT_DIM)),                   # Whb   [128, 9]
            pinned((1, _BPACK_COLS)),                       # biases [1, 384] f32
        ],
        out_specs=pl.BlockSpec((tb, OUT_DIM), lambda i: (i, 0)),
        compiler_params=pltpu.CompilerParams(
            dimension_semantics=("parallel",),
            vmem_limit_bytes=_VMEM_LIMIT_BYTES,
        ),
    )(x, w_in, w2h, whb, b_pack)

    return out[:B]


# ----------------------------------------------------------------------------
# Reference + init (for the self-test)
# ----------------------------------------------------------------------------
def init_params(key):
    """Deterministic init mimicking nn.Linear (uniform +/- 1/sqrt(fan_in)).
    Weights stored as [in_features, out_features]."""
    def linear(key, fan_in, fan_out):
        kw, kb = jax.random.split(key)
        bound = 1.0 / jnp.sqrt(fan_in)
        w = jax.random.uniform(kw, (fan_in, fan_out), jnp.float32, -bound, bound)
        b = jax.random.uniform(kb, (1, fan_out), jnp.float32, -bound, bound)
        return w, b

    k1, k2, k3, k4 = jax.random.split(key, 4)
    w1, b1 = linear(k1, STATE_SIZE, FC1_UNITS)
    w2, b2 = linear(k2, FC1_UNITS + RECURRENT_SIZE, FC2_UNITS)
    w3, b3 = linear(k3, FC1_UNITS + FC2_UNITS, RECURRENT_SIZE)
    w4, b4 = linear(k4, FC2_UNITS, ACTION_SIZE)
    return (w1, b1, w2, b2, w3, b3, w4, b4)


def reference_forward(x, params):
    (w1, b1, w2, b2, w3, b3, w4, b4) = params
    obs = x[:, :STATE_SIZE]
    prev_rec = x[:, -RECURRENT_SIZE:]
    x1 = jax.nn.relu(obs @ w1 + b1)
    x2 = jax.nn.relu(jnp.concatenate([x1, prev_rec], axis=1) @ w2 + b2)
    rec = jax.nn.sigmoid(jnp.concatenate([x1, x2], axis=1) @ w3 + b3)
    act = x2 @ w4 + b4
    return jnp.concatenate([act, rec], axis=1)


if __name__ == "__main__":
    key = jax.random.PRNGKey(0)
    k_params, k_x = jax.random.split(key)
    params = init_params(k_params)

    packed_f32 = pack_params(params, mxu_dtype=jnp.float32)   # exact path
    packed_bf16 = pack_params(params)                          # fast (bf16 MXU) path

    # --- exact-math check (f32 MXU operands), single block ------------------
    B = 8
    x = jax.random.normal(k_x, (B, IN_DIM), jnp.float32)
    ref = reference_forward(x, params)

    out_f32 = jax.block_until_ready(internal_qnetwork_forward(x, packed_f32))
    assert out_f32.shape == (B, OUT_DIM), out_f32.shape
    assert jnp.allclose(out_f32, ref, atol=1e-4, rtol=1e-4), (
        float(jnp.max(jnp.abs(out_f32 - ref))))

    # --- bf16-MXU fast path (f32 accumulation), loose tolerance --------------
    out_bf16 = jax.block_until_ready(internal_qnetwork_forward(x, packed_bf16))
    assert jnp.allclose(out_bf16, ref, atol=3e-2, rtol=3e-2), (
        float(jnp.max(jnp.abs(out_bf16 - ref))))

    # --- multi-tile grid + tail-padding path (B not a multiple of the tile) --
    B2 = 20
    x2 = jax.random.normal(jax.random.PRNGKey(1), (B2, IN_DIM), jnp.float32)
    ref2 = reference_forward(x2, params)
    out2 = jax.block_until_ready(
        internal_qnetwork_forward(x2, packed_bf16, block_b=8))
    assert out2.shape == (B2, OUT_DIM), out2.shape
    assert jnp.allclose(out2, ref2, atol=3e-2, rtol=3e-2), (
        float(jnp.max(jnp.abs(out2 - ref2))))

    print("KERNEL_OK")
</pallas_src>

<mosaic_0001>
module attributes {stable_mosaic.version = 11 : i64} {
  func.func @_qnet_kernel(%arg0: i32, %arg1: memref<8x13xf32, #tpu.memory_space<vmem>>, %arg2: memref<13x256xf32, #tpu.memory_space<vmem>>, %arg3: memref<64x137xf32, #tpu.memory_space<vmem>>, %arg4: memref<128x9xf32, #tpu.memory_space<vmem>>, %arg5: memref<1x384xf32, #tpu.memory_space<vmem>>, %arg6: memref<8x9xf32, #tpu.memory_space<vmem>>) attributes {dimension_semantics = [#tpu.dimension_semantics<parallel>], iteration_bounds = array<i64: 1>, scalar_prefetch = 0 : i64, scratch_operands = 0 : i64, tpu.core_type = #tpu.core_type<tc>, window_params = [{transform_indices = @transform_0, window_bounds = array<i64: 8, 13>}, {pipeline_mode = #tpu.pipeline_mode<synchronous>, transform_indices = @transform_1, window_bounds = array<i64: 13, 256>}, {pipeline_mode = #tpu.pipeline_mode<synchronous>, transform_indices = @transform_2, window_bounds = array<i64: 64, 137>}, {pipeline_mode = #tpu.pipeline_mode<synchronous>, transform_indices = @transform_3, window_bounds = array<i64: 128, 9>}, {pipeline_mode = #tpu.pipeline_mode<synchronous>, transform_indices = @transform_4, window_bounds = array<i64: 1, 384>}, {transform_indices = @transform_5, window_bounds = array<i64: 8, 9>}]} {
    %c0 = arith.constant 0 : index
    %c0_0 = arith.constant 0 : index
    %0 = vector.load %arg5[%c0, %c0_0] : memref<1x384xf32, #tpu.memory_space<vmem>>, vector<1x64xf32>
    %c0_1 = arith.constant 0 : index
    %c128 = arith.constant 128 : index
    %1 = vector.load %arg5[%c0_1, %c128] : memref<1x384xf32, #tpu.memory_space<vmem>>, vector<1x128xf32>
    %c0_2 = arith.constant 0 : index
    %c256 = arith.constant 256 : index
    %2 = vector.load %arg5[%c0_2, %c256] : memref<1x384xf32, #tpu.memory_space<vmem>>, vector<1x9xf32>
    %c0_3 = arith.constant 0 : index
    %c0_4 = arith.constant 0 : index
    %3 = vector.load %arg1[%c0_3, %c0_4] : memref<8x13xf32, #tpu.memory_space<vmem>>, vector<8x13xf32>
    %c0_5 = arith.constant 0 : index
    %c0_6 = arith.constant 0 : index
    %4 = vector.load %arg2[%c0_5, %c0_6] : memref<13x256xf32, #tpu.memory_space<vmem>>, vector<13x256xf32>
    %cst = arith.constant dense<0.000000e+00> : vector<8x256xf32>
    %5 = tpu.matmul %3, %4, %cst {dimension_numbers = #tpu.dot_dimension_numbers<[1], [0], [0], [1], [0, 0, 1, 1], [], []>} : vector<8x13xf32>, vector<13x256xf32>, vector<8x256xf32> -> vector<8x256xf32>
    %6 = vector.extract_strided_slice %5 {offsets = [0, 0], sizes = [8, 64], strides = [1, 1]} : vector<8x256xf32> to vector<8x64xf32>
    %7 = vector.broadcast %0 : vector<1x64xf32> to vector<8x64xf32>
    %8 = arith.addf %6, %7 : vector<8x64xf32>
    %cst_7 = arith.constant 0.000000e+00 : f32
    %9 = vector.broadcast %cst_7 : f32 to vector<8x64xf32>
    %10 = arith.maximumf %8, %9 : vector<8x64xf32>
    %c0_8 = arith.constant 0 : index
    %c0_9 = arith.constant 0 : index
    %11 = vector.load %arg3[%c0_8, %c0_9] : memref<64x137xf32, #tpu.memory_space<vmem>>, vector<64x137xf32>
    %cst_10 = arith.constant dense<0.000000e+00> : vector<8x137xf32>
    %12 = tpu.matmul %10, %11, %cst_10 {dimension_numbers = #tpu.dot_dimension_numbers<[1], [0], [0], [1], [0, 0, 1, 1], [], []>} : vector<8x64xf32>, vector<64x137xf32>, vector<8x137xf32> -> vector<8x137xf32>
    %13 = vector.extract_strided_slice %12 {offsets = [0, 0], sizes = [8, 128], strides = [1, 1]} : vector<8x137xf32> to vector<8x128xf32>
    %14 = vector.extract_strided_slice %5 {offsets = [0, 128], sizes = [8, 128], strides = [1, 1]} : vector<8x256xf32> to vector<8x128xf32>
    %15 = arith.addf %13, %14 : vector<8x128xf32>
    %16 = vector.broadcast %1 : vector<1x128xf32> to vector<8x128xf32>
    %17 = arith.addf %15, %16 : vector<8x128xf32>
    %cst_11 = arith.constant 0.000000e+00 : f32
    %18 = vector.broadcast %cst_11 : f32 to vector<8x128xf32>
    %19 = arith.maximumf %17, %18 : vector<8x128xf32>
    %c0_12 = arith.constant 0 : index
    %c0_13 = arith.constant 0 : index
    %20 = vector.load %arg4[%c0_12, %c0_13] : memref<128x9xf32, #tpu.memory_space<vmem>>, vector<128x9xf32>
    %cst_14 = arith.constant dense<0.000000e+00> : vector<8x9xf32>
    %21 = tpu.matmul %19, %20, %cst_14 {dimension_numbers = #tpu.dot_dimension_numbers<[1], [0], [0], [1], [0, 0, 1, 1], [], []>} : vector<8x128xf32>, vector<128x9xf32>, vector<8x9xf32> -> vector<8x9xf32>
    %22 = vector.extract_strided_slice %12 {offsets = [0, 128], sizes = [8, 9], strides = [1, 1]} : vector<8x137xf32> to vector<8x9xf32>
    %23 = arith.addf %21, %22 : vector<8x9xf32>
    %24 = vector.broadcast %2 : vector<1x9xf32> to vector<8x9xf32>
    %25 = arith.addf %23, %24 : vector<8x9xf32>
    %26 = tpu.iota {dimensions = array<i32: 1>} : vector<8x9xi32>
    %c4_i32 = arith.constant 4 : i32
    %27 = vector.broadcast %c4_i32 : i32 to vector<8x9xi32>
    %28 = arith.cmpi slt, %26, %27 : vector<8x9xi32>
    %29 = arith.negf %25 : vector<8x9xf32>
    %30 = math.exp %29 : vector<8x9xf32>
    %cst_15 = arith.constant 1.000000e+00 : f32
    %31 = vector.broadcast %cst_15 : f32 to vector<8x9xf32>
    %32 = arith.addf %31, %30 : vector<8x9xf32>
    %33 = arith.divf %31, %32 : vector<8x9xf32>
    %34 = arith.select %28, %25, %33 : vector<8x9xi1>, vector<8x9xf32>
    %c0_16 = arith.constant 0 : index
    %c0_17 = arith.constant 0 : index
    %35 = vector.load %arg6[%c0_16, %c0_17] : memref<8x9xf32, #tpu.memory_space<vmem>>, vector<8x9xf32>
    tpu.vector_store %arg6[%c0_16, %c0_17], %34 {strides = array<i32>} : memref<8x9xf32, #tpu.memory_space<vmem>>, vector<8x9xf32>,
    return
  }
  func.func @transform_0(%arg0: i32) -> (i32, i32) {
    %c0_i32 = arith.constant 0 : i32
    %c0_i32_0 = arith.constant 0 : i32
    return %arg0, %c0_i32 : i32, i32
  }
  func.func @transform_1(%arg0: i32) -> (i32, i32) {
    %c0_i32 = arith.constant 0 : i32
    %c0_i32_0 = arith.constant 0 : i32
    %c0_i32_1 = arith.constant 0 : i32
    return %c0_i32, %c0_i32_0 : i32, i32
  }
  func.func @transform_2(%arg0: i32) -> (i32, i32) {
    %c0_i32 = arith.constant 0 : i32
    %c0_i32_0 = arith.constant 0 : i32
    %c0_i32_1 = arith.constant 0 : i32
    return %c0_i32, %c0_i32_0 : i32, i32
  }
  func.func @transform_3(%arg0: i32) -> (i32, i32) {
    %c0_i32 = arith.constant 0 : i32
    %c0_i32_0 = arith.constant 0 : i32
    %c0_i32_1 = arith.constant 0 : i32
    return %c0_i32, %c0_i32_0 : i32, i32
  }
  func.func @transform_4(%arg0: i32) -> (i32, i32) {
    %c0_i32 = arith.constant 0 : i32
    %c0_i32_0 = arith.constant 0 : i32
    %c0_i32_1 = arith.constant 0 : i32
    return %c0_i32, %c0_i32_0 : i32, i32
  }
  func.func @transform_5(%arg0: i32) -> (i32, i32) {
    %c0_i32 = arith.constant 0 : i32
    %c0_i32_0 = arith.constant 0 : i32
    return %arg0, %c0_i32 : i32, i32
  }
}

</mosaic_0001>

<bundles_post_ra>
// kernel: tpu_custom_call.1
= control target key start
LH: loop header
LB: loop body
LE: loop exit
PB: predicated region body
PF: predicated region fallthrough
CT: control target
= control target key end

     0   :  { %10 = vsyncpa [#allocation3], 0  ;;  %s471_s0 = inlined_call_operand.vmem [shape: f32[8,13], index: 0, kind: input, shape index: {}]   ;;  %s472_s1 = inlined_call_operand.hbm [shape: f32[13,256], index: 1, kind: input, shape index: {}]   ;;  %s473_s2 = inlined_call_operand.vmem [shape: f32[64,137], index: 2, kind: input, shape index: {}]   ;;  %s474_s3 = inlined_call_operand.vmem [shape: f32[128,9], index: 3, kind: input, shape index: {}]   ;;  %s475_s4 = inlined_call_operand.vmem [shape: f32[1,384], index: 4, kind: input, shape index: {}]   ;;  %s476_s5 = inlined_call_operand.hbm [shape: f32[8,9], index: 5, kind: output, shape index: {}]  }
   0x1   :  { %11 = vsyncpa [#allocation4], 0  ;;  %s18_s20 = sshll.u32 %s472_s1, 4  ;;  %s319_s21 = smov [#allocation2]   ;;  %s19_s20 = int_to_ptr.hbm [resolvable:$true] %s18_s20 }
   0x2   :  { %s20_s22 = sshll.u32 %s319_s21, 4  ;;  %s320_s23 = smov 256   ;;  %s21_s22 = int_to_ptr.vmem [resolvable:$true] %s20_s22 }
   0x3   :  { %s321_s24 = smov 16  }
   0x4   :  { %26 = dma.hbm_to_vmem [thread:$0]  %s19_s20, 512, %s21_s22, [#allocation3], %s320_s23, %s320_s23, %s321_s24  }
   0x5   :  { %315 = dma.done.wait [#allocation3], 512  }
   0x6   :  { %316 = vsyncadd [#allocation3], 4294966784  ;;  %vm49_vm0 = vcmask 1044480   ;;  %v43_v0 = vld [vmem:[#allocation2 + $0x10] sm:$0x1f]  ;;  %v41_v1 = vld [vmem:[#allocation2] sm:$0xff]  ;;  %v207_v56 = vlaneseq }
   0x7   :  { %v40_v2 = vld [vmem:[%s471_s0] sm:$0xff]  ;;  %249 = vmatpush.msk.msra.mxu1 %vm49_vm0, %v43_v0  ;;  %vm45_vm1 = vcmask 105472   ;;  %v115_v3 = vld [vmem:[%s473_s2 + $0x70] sm:$0xff]  ;;  %v116_v4 = vld [vmem:[%s473_s2 + $0x78] sm:$0xff]  ;;  %vm117_vm2 = vcmask 523264   ;;  %s239_s16 = sshll.u32 %s476_s5, 4  ;;  %s240_s16 = int_to_ptr.hbm [resolvable:$true] %s239_s16 }
   0x8   :  { %v113_v5 = vld [vmem:[%s473_s2 + $0x60] sm:$0xff]  ;;  %129 = vmatpush.msra.mxu2 %v115_v3  ;;  %149 = vmatpush.msra.mxu3 %v116_v4  ;;  %v114_v6 = vld [vmem:[%s473_s2 + $0x68] sm:$0xff]  ;;  %v111_v7 = vld [vmem:[%s473_s2 + $0x50] sm:$0xff]  ;;  %v208_v59 = vand.u32 127, %v207_v56  ;;  %vm230_vm8 = vcmask 72704  }
   0x9   :  { %71 = vmatpush.msra.mxu1 %v41_v1  ;;  %v112_v8 = vld [vmem:[%s473_s2 + $0x58] sm:$0xff]  ;;  %v109_v9 = vld [vmem:[%s473_s2 + $0x40] sm:$0xff]  ;;  %v110_v10 = vld [vmem:[%s473_s2 + $0x48] sm:$0xff] }
   0xa   :  { %250 = vmatmul.msk.f32.vlgmr.msra.gmra.mxu1 %vm45_vm1, %v40_v2  ;;  %130 = vmatpush.msra.mxu2 %v113_v5  ;;  %v107_v11 = vld [vmem:[%s473_s2 + $0x30] sm:$0xff]  ;;  %v108_v12 = vld [vmem:[%s473_s2 + $0x38] sm:$0xff]  ;;  %v105_v13 = vld [vmem:[%s473_s2 + $0x20] sm:$0xff]  ;;  %vm209_vm5 = vcmp.lt.s32.totalorder %v208_v59, 4 }
   0xb   :  { %150 = vmatpush.msra.mxu3 %v114_v6  ;;  %v106_v14 = vld [vmem:[%s473_s2 + $0x28] sm:$0xff]  ;;  %v103_v15 = vld [vmem:[%s473_s2 + $0x10] sm:$0xff]  ;;  %v104_v16 = vld [vmem:[%s473_s2 + $0x18] sm:$0xff] }
   0xc   :  { %131 = vmatpush.msra.mxu2 %v111_v7  ;;  %v44_v17 = vld [vmem:[#allocation2 + $0x18] sm:$0x1f]  ;;  %v101_v18 = vld [vmem:[%s473_s2] sm:$0xff]  ;;  %v102_v19 = vld [vmem:[%s473_s2 + $0x8] sm:$0xff] }
   0xd   :  { %151 = vmatpush.msra.mxu3 %v112_v8  ;;  %251 = vmatpush.msk.msrb.mxu1 %vm49_vm0, %v44_v17  ;;  %v42_v20 = vld [vmem:[#allocation2 + $0x8] sm:$0xff]  ;;  %v182_v21 = vld [vmem:[%s474_s3 + $0x78] sm:$0xff]  ;;  %v181_v22 = vld [vmem:[%s474_s3 + $0x70] sm:$0xff] }
   0xe   :  { %132 = vmatpush.msra.mxu2 %v109_v9  ;;  %183 = vmatpush.msra.mxu0 %v182_v21  ;;  %v180_v23 = vld [vmem:[%s474_s3 + $0x68] sm:$0xff]  ;;  %v179_v24 = vld [vmem:[%s474_s3 + $0x60] sm:$0xff]  ;;  %v178_v25 = vld [vmem:[%s474_s3 + $0x58] sm:$0xff] }
   0xf   :  { %152 = vmatpush.msra.mxu3 %v110_v10  ;;  %91 = vmatpush.msrb.mxu1 %v42_v20  ;;  %v177_v26 = vld [vmem:[%s474_s3 + $0x50] sm:$0xff]  ;;  %v176_v27 = vld [vmem:[%s474_s3 + $0x48] sm:$0xff]  ;;  %v175_v28 = vld [vmem:[%s474_s3 + $0x40] sm:$0xff] }
  0x10   :  { %133 = vmatpush.msra.mxu2 %v107_v11  ;;  %184 = vmatpush.msra.mxu0 %v181_v22  ;;  %v174_v29 = vld [vmem:[%s474_s3 + $0x38] sm:$0xff]  ;;  %v173_v30 = vld [vmem:[%s474_s3 + $0x30] sm:$0xff]  ;;  %v172_v31 = vld [vmem:[%s474_s3 + $0x28] sm:$0xff] }
  0x11   :  { %153 = vmatpush.msra.mxu3 %v108_v12  ;;  %v171_v32 = vld [vmem:[%s474_s3 + $0x20] sm:$0xff]  ;;  %v170_v37 = vld [vmem:[%s474_s3 + $0x18] sm:$0xff]  ;;  %v169_v38 = vld [vmem:[%s474_s3 + $0x10] sm:$0xff] }
  0x12   :  { %134 = vmatpush.msra.mxu2 %v105_v13  ;;  %252 = vmatmul.msk.f32.vlgmr.msrb.gmra.mxu1 %vm45_vm1, %v40_v2  ;;  %v260_v33 = vld [vmem:[%s475_s4] ss:$0 sm:$0xff]  ;;  %v168_v39 = vld [vmem:[%s474_s3 + $0x8] sm:$0xff]  ;;  %v261_v42 = vld [vmem:[%s475_s4 + $0x1] ss:$0 sm:$0xff] }
  0x13   :  { %154 = vmatpush.msra.mxu3 %v106_v14  ;;  %185 = vmatpush.msra.mxu0 %v180_v23  ;;  %v167_v40 = vld [vmem:[%s474_s3] sm:$0xff]  ;;  %s322_s3 = smov [#allocation5]  }
  0x14   :  { %135 = vmatpush.msra.mxu2 %v103_v15  ;;  %v262_v47 = vld [vmem:[%s475_s4 + $0x2] ss:$0 sm:$0xff]  ;;  %s237_s4 = sshll.u32 %s322_s3, 4  ;;  %s238_s4 = int_to_ptr.vmem [resolvable:$true] %s237_s4 }
  0x15   :  { %155 = vmatpush.msra.mxu3 %v104_v16  ;;  %186 = vmatpush.msra.mxu0 %v179_v24 }
  0x16   :  { %136 = vmatpush.msra.mxu2 %v101_v18 }
  0x17   :  { %156 = vmatpush.msra.mxu3 %v102_v19  ;;  %187 = vmatpush.msra.mxu0 %v178_v25 }
  0x19   :  { %188 = vmatpush.msra.mxu0 %v177_v26 }
  0x1b   :  { %189 = vmatpush.msra.mxu0 %v176_v27 }
  0x1d   :  { %190 = vmatpush.msra.mxu0 %v175_v28 }
  0x1f   :  { %191 = vmatpush.msra.mxu0 %v174_v29 }
  0x21   :  { %192 = vmatpush.msra.mxu0 %v173_v30 }
  0x23   :  { %193 = vmatpush.msra.mxu0 %v172_v31 }
  0x25   :  { %194 = vmatpush.msra.mxu0 %v171_v32 }
  0x27   :  { %195 = vmatpush.msra.mxu0 %v170_v37 }
  0x29   :  { %196 = vmatpush.msra.mxu0 %v169_v38 }
  0x2b   :  { %197 = vmatpush.msra.mxu0 %v168_v39 }
  0x2d   :  { %198 = vmatpush.msra.mxu0 %v167_v40 }
  0x87   :  { %v73_v34 = vpop.f32.mrf.mxu1 }
  0x88   :  { %v99_v35 = vadd.f32 %v260_v33, %v73_v34 }
  0x8a   :  { %v100_v36 = vmax.f32 %v99_v35, 0.0 }
  0x8c   :  { %253 = vmatmul.msk.f32.vlgmr.msra.gmra.mxu2 %vm117_vm2, %v100_v36  ;;  %254 = vmatmul.msk.f32.vlgmr.msra.gmra.mxu3 %vm117_vm2, %v100_v36 }
  0x8f   :  { %v93_v41 = vpop.f32.mrf.mxu1 }
 0x10f   :  { %v138_v43 = vpop.f32.mrf.mxu2  ;;  %v158_v48 = vpop.f32.mrf.mxu3 }
 0x110   :  { %v161_v44 = vadd.f32 %v138_v43, %v93_v41 }
 0x112   :  { %v165_v45 = vadd.f32 %v261_v42, %v161_v44 }
 0x114   :  { %v166_v46 = vmax.f32 %v165_v45, 0.0 }
 0x116   :  { %199 = vmatmul.f32.vlgmr.msra.gmra.mxu0 %v166_v46 }
 0x193   :  { %v200_v49 = vpop.f32.mrf.mxu0 }
 0x194   :  { %v201_v50 = vadd.f32 %v200_v49, %v158_v48 }
 0x196   :  { %v206_v51 = vadd.f32 %v262_v47, %v201_v50 }
 0x198   :  { %v255_v52 = vmul.f32 -1.442695, %v206_v51 }
 0x19a   :  { %263 = vpow2.f32 %v255_v52 }
 0x1a0   :  { %v264_v53 = vpop.eup %263 }
 0x1a1   :  { %v213_v54 = vadd.f32 1.0, %v264_v53 }
 0x1a3   :  { %265 = vrcp.f32 %v213_v54  ;;  %v225_v60 = vand.u32 2147483648, %v213_v54  ;;  %v223_v62 = vand.u32 2147483647, %v213_v54  ;;  %vm219_vm4 = vweird.f32 %v213_v54 }
 0x1a5   :  { %v226_v0 = vor.u32 1.1754944e-38, %v225_v60  ;;  %vm224_vm7 = vcmp.eq.f32.partialorder %v223_v62, 8.507059e+37 }
 0x1a9   :  { %v266_v55 = vpop.eup %265 }
 0x1aa   :  { %v215_v57 = vmul.f32 %v266_v55, %v213_v54  ;;  %vm220_vm3 = vweird.f32 %v266_v55 }
 0x1ab   :  { %vm221_vm6 = vmor %vm219_vm4, %vm220_vm3 }
 0x1ac   :  { %v216_v58 = vsub.f32 1.0, %v215_v57 }
 0x1ae   :  { %v217_v61 = vmul.f32 %v266_v55, %v216_v58 }
 0x1b0   :  { %v218_v63 = vadd.f32 %v266_v55, %v217_v61 }
 0x1b2   :  { %v222_v1 = vsel %vm221_vm6, %v266_v55, %v218_v63 }
 0x1b3   :  { %v227_v2 = vsel %vm224_vm7, %v226_v0, %v222_v1 }
 0x1b4   :  { %v229_v3 = vsel %vm209_vm5, %v206_v51, %v227_v2 }
 0x1b5   :  { %231 = vst.msk [vmem:[#allocation5] sm:$0xff] %vm230_vm8, %v229_v3 }
 0x1b6   :  { %242 = dma.vmem_to_hbm [thread:$0]  %s238_s4, 128, %s240_s16, [#allocation4]  }
 0x1b7   :  { %317 = dma.done.wait [#allocation4], 128  }
 0x1b8   :  { %318 = vsyncadd [#allocation4], 4294967168 }
 0x1b9   :  { %247 = vsyncpa [#allocation3], 1 }
 0x1ba   :  { %248 = vsyncpa [#allocation4], 1 }

</bundles_post_ra>
